<compile_context>
chip_gen: v7x
topology: tpu7x:2x2x1
jax: 0.10.0
libtpu: 0.0.40
codegen_flags: <defaults>
</compile_context>

<pallas_src>
import math

import jax
import jax.numpy as jnp
from jax.experimental import pallas as pl
from jax.experimental.pallas import tpu as pltpu


def pred_diff_kernel(x1_ref, x2_ref, w1_ref, b1_ref, w2_ref, b2_ref, o_ref):
    def predict(x):
        # layer 1: MXU matmul, f32 accumulation, ReLU on the VPU
        h = jnp.dot(x, w1_ref[...], preferred_element_type=jnp.float32) + b1_ref[...]
        h = jnp.maximum(h, 0.0)
        # layer 2 logits; sigmoid(s) > 0.5  <=>  s > 0 (monotone)
        s = jnp.dot(h, w2_ref[...], preferred_element_type=jnp.float32) + b2_ref[...]
        return s > 0.0

    # Two independent branches (no concat -> no extra VMEM copy in a
    # memory-bound kernel).  XOR == clamp(|o1 - o2|, 0, 1) for {0,1} outputs.
    diff = (predict(x1_ref[...]) != predict(x2_ref[...])).astype(jnp.float32)

    # If o_ref is the lane-dense (tile_b*O/128, 128) block this reshape is an
    # XLU relayout; otherwise it is a no-op (same shape).
    o_ref[...] = diff.reshape(o_ref.shape)


def _round_up(x, m):
    return ((x + m - 1) // m) * m


def _choose_tile_b(B, O):
    """Batch-tile heuristic: big tiles (<= 2048 rows) to amortize per-step
    overhead, >=2 grid steps when B allows it (v7x dual TensorCore), multiple
    of 8 sublanes, and -- if the row padding stays small -- sized so tile_b*O
    flattens into whole (8,128) tiles for lane-dense (unmasked) output stores."""
    if B < 16:
        return max(8, _round_up(B, 8))
    n_steps = max(2, pl.cdiv(B, 2048))            # cap tiles at ~2048 rows
    tile_b = _round_up(pl.cdiv(B, n_steps), 8)
    # Nudge so (tile_b * O) % 1024 == 0 (whole (8,128) output tiles), but only
    # if the extra padded rows stay small.
    lane_mult = 1024 // math.gcd(O, 1024)
    tile_dense = _round_up(tile_b, lane_mult)
    if tile_dense - tile_b <= max(8, tile_b // 8):
        tile_b = tile_dense
    return tile_b


def wrapper_pred_diff(x1, x2, w1, b1, w2, b2, tile_b=None):
    B, D = x1.shape
    H = w1.shape[1]
    O = w2.shape[1]
    assert x2.shape == (B, D)

    if tile_b is None:
        tile_b = _choose_tile_b(B, O)
    tile_b = max(8, _round_up(tile_b, 8))

    # Pad the batch to a tile multiple (no divisibility assert); padded rows
    # are computed and sliced away afterwards.
    B_pad = pl.cdiv(B, tile_b) * tile_b
    if B_pad != B:
        pad = ((0, B_pad - B), (0, 0))
        x1 = jnp.pad(x1, pad)
        x2 = jnp.pad(x2, pad)
    grid_steps = B_pad // tile_b

    # Lane-dense output layout when the per-tile output flattens into whole
    # (8,128) tiles; falls back to (tile_b, O) (valid because O is the full
    # last dim) for tiny batches.
    lane_dense = (tile_b * O) % (8 * 128) == 0
    if lane_dense:
        rows_per_tile = (tile_b * O) // 128
        out_shape = jax.ShapeDtypeStruct((grid_steps * rows_per_tile, 128), jnp.float32)
        out_spec = pl.BlockSpec((rows_per_tile, 128), lambda i: (i, 0))
    else:
        out_shape = jax.ShapeDtypeStruct((B_pad, O), jnp.float32)
        out_spec = pl.BlockSpec((tile_b, O), lambda i: (i, 0))

    # x1/x2 stream tiles; deeper multi-buffering only when the grid is long
    # enough to benefit (hides DMA issue latency of small per-step transfers).
    if grid_steps >= 4:
        def x_spec():
            return pl.BlockSpec((tile_b, D), lambda i: (i, 0),
                                pipeline_mode=pl.Buffered(3))
    else:
        def x_spec():
            return pl.BlockSpec((tile_b, D), lambda i: (i, 0))

    in_specs = [
        x_spec(),                                   # x1 tile
        x_spec(),                                   # x2 tile
        pl.BlockSpec((D, H), lambda i: (0, 0)),     # W1 (VMEM-resident)
        pl.BlockSpec((1, H), lambda i: (0, 0)),     # b1
        pl.BlockSpec((H, O), lambda i: (0, 0)),     # W2
        pl.BlockSpec((1, O), lambda i: (0, 0)),     # b2
    ]

    out = pl.pallas_call(
        pred_diff_kernel,
        out_shape=out_shape,
        grid=(grid_steps,),
        in_specs=in_specs,
        out_specs=out_spec,
        # Batch axis is embarrassingly parallel -> shards across v7x's 2 TCs;
        # harmless on v5e/v6e (1 TC).
        compiler_params=pltpu.CompilerParams(
            dimension_semantics=("parallel",),
        ),
    )(x1, x2, w1, b1, w2, b2)

    if lane_dense:
        out = out.reshape(B_pad, O)   # free row-major view back to (B_pad, O)
    return out[:B]


def reference(x1, x2, w1, b1, w2, b2):
    def fwd(x):
        h = jnp.maximum(x @ w1 + b1, 0.0)
        p = jax.nn.sigmoid(h @ w2 + b2)
        return (p > 0.5).astype(jnp.float32)
    return jnp.clip(jnp.abs(fwd(x1) - fwd(x2)), 0.0, 1.0)


def _run_case(B, D, H, O, seed):
    key = jax.random.PRNGKey(seed)
    k_x1, k_x2, k_w1, k_b1, k_w2, k_b2 = jax.random.split(key, 6)

    x1 = jax.random.normal(k_x1, (B, D), dtype=jnp.float32)
    x2 = jax.random.normal(k_x2, (B, D), dtype=jnp.float32)

    # Deterministic synthetic parameters for the wrapped model.
    # TODO(synk): `original_model` (and deactivate_threshold_mode / one_pass)
    # is undefined in the spec; modeled as a 2-layer MLP sigmoid classifier.
    w1 = jax.random.normal(k_w1, (D, H), dtype=jnp.float32) * 0.2
    b1 = jax.random.normal(k_b1, (1, H), dtype=jnp.float32) * 0.1
    w2 = jax.random.normal(k_w2, (H, O), dtype=jnp.float32) * 0.2
    b2 = jax.random.normal(k_b2, (1, O), dtype=jnp.float32) * 0.1

    out = jax.block_until_ready(wrapper_pred_diff(x1, x2, w1, b1, w2, b2))
    ref = reference(x1, x2, w1, b1, w2, b2)

    assert out.shape == (B, O), (out.shape, (B, O))
    assert out.dtype == jnp.float32
    assert jnp.array_equal(out, ref), f"mismatch vs reference at B={B}"


if __name__ == "__main__":
    # Tiny single-tile case (fallback (tile_b, O) output layout).
    _run_case(B=8, D=32, H=64, O=8, seed=0)
    # >=2 grid steps (exercises v7x dual-TC sharding) + lane-dense output path.
    _run_case(B=256, D=32, H=64, O=8, seed=0)
    # Batch not divisible by the tile -> padding path.
    _run_case(B=200, D=32, H=64, O=8, seed=0)
    print("KERNEL_OK")
</pallas_src>

<mosaic_0001>
module attributes {stable_mosaic.version = 11 : i64} {
  func.func @pred_diff_kernel(%arg0: i32, %arg1: memref<8x32xf32, #tpu.memory_space<vmem>>, %arg2: memref<8x32xf32, #tpu.memory_space<vmem>>, %arg3: memref<32x64xf32, #tpu.memory_space<vmem>>, %arg4: memref<1x64xf32, #tpu.memory_space<vmem>>, %arg5: memref<64x8xf32, #tpu.memory_space<vmem>>, %arg6: memref<1x8xf32, #tpu.memory_space<vmem>>, %arg7: memref<8x8xf32, #tpu.memory_space<vmem>>) attributes {dimension_semantics = [#tpu.dimension_semantics<parallel>], iteration_bounds = array<i64: 1>, scalar_prefetch = 0 : i64, scratch_operands = 0 : i64, tpu.core_type = #tpu.core_type<tc>, window_params = [{transform_indices = @transform_0, window_bounds = array<i64: 8, 32>}, {transform_indices = @transform_1, window_bounds = array<i64: 8, 32>}, {pipeline_mode = #tpu.pipeline_mode<synchronous>, transform_indices = @transform_2, window_bounds = array<i64: 32, 64>}, {pipeline_mode = #tpu.pipeline_mode<synchronous>, transform_indices = @transform_3, window_bounds = array<i64: 1, 64>}, {pipeline_mode = #tpu.pipeline_mode<synchronous>, transform_indices = @transform_4, window_bounds = array<i64: 64, 8>}, {pipeline_mode = #tpu.pipeline_mode<synchronous>, transform_indices = @transform_5, window_bounds = array<i64: 1, 8>}, {transform_indices = @transform_6, window_bounds = array<i64: 8, 8>}]} {
    %c0 = arith.constant 0 : index
    %c0_0 = arith.constant 0 : index
    %0 = vector.load %arg1[%c0, %c0_0] : memref<8x32xf32, #tpu.memory_space<vmem>>, vector<8x32xf32>
    %c0_1 = arith.constant 0 : index
    %c0_2 = arith.constant 0 : index
    %1 = vector.load %arg3[%c0_1, %c0_2] : memref<32x64xf32, #tpu.memory_space<vmem>>, vector<32x64xf32>
    %cst = arith.constant dense<0.000000e+00> : vector<8x64xf32>
    %2 = tpu.matmul %0, %1, %cst {dimension_numbers = #tpu.dot_dimension_numbers<[1], [0], [0], [1], [0, 0, 1, 1], [], []>} : vector<8x32xf32>, vector<32x64xf32>, vector<8x64xf32> -> vector<8x64xf32>
    %c0_3 = arith.constant 0 : index
    %c0_4 = arith.constant 0 : index
    %3 = vector.load %arg4[%c0_3, %c0_4] : memref<1x64xf32, #tpu.memory_space<vmem>>, vector<1x64xf32>
    %4 = vector.broadcast %3 : vector<1x64xf32> to vector<8x64xf32>
    %5 = arith.addf %2, %4 : vector<8x64xf32>
    %cst_5 = arith.constant 0.000000e+00 : f32
    %6 = vector.broadcast %cst_5 : f32 to vector<8x64xf32>
    %7 = arith.maximumf %5, %6 : vector<8x64xf32>
    %c0_6 = arith.constant 0 : index
    %c0_7 = arith.constant 0 : index
    %8 = vector.load %arg5[%c0_6, %c0_7] : memref<64x8xf32, #tpu.memory_space<vmem>>, vector<64x8xf32>
    %cst_8 = arith.constant dense<0.000000e+00> : vector<8x8xf32>
    %9 = tpu.matmul %7, %8, %cst_8 {dimension_numbers = #tpu.dot_dimension_numbers<[1], [0], [0], [1], [0, 0, 1, 1], [], []>} : vector<8x64xf32>, vector<64x8xf32>, vector<8x8xf32> -> vector<8x8xf32>
    %c0_9 = arith.constant 0 : index
    %c0_10 = arith.constant 0 : index
    %10 = vector.load %arg6[%c0_9, %c0_10] : memref<1x8xf32, #tpu.memory_space<vmem>>, vector<1x8xf32>
    %11 = vector.broadcast %10 : vector<1x8xf32> to vector<8x8xf32>
    %12 = arith.addf %9, %11 : vector<8x8xf32>
    %cst_11 = arith.constant 0.000000e+00 : f32
    %13 = vector.broadcast %cst_11 : f32 to vector<8x8xf32>
    %14 = arith.cmpf ogt, %12, %13 : vector<8x8xf32>
    %c0_12 = arith.constant 0 : index
    %c0_13 = arith.constant 0 : index
    %15 = vector.load %arg2[%c0_12, %c0_13] : memref<8x32xf32, #tpu.memory_space<vmem>>, vector<8x32xf32>
    %c0_14 = arith.constant 0 : index
    %c0_15 = arith.constant 0 : index
    %16 = vector.load %arg3[%c0_14, %c0_15] : memref<32x64xf32, #tpu.memory_space<vmem>>, vector<32x64xf32>
    %cst_16 = arith.constant dense<0.000000e+00> : vector<8x64xf32>
    %17 = tpu.matmul %15, %16, %cst_16 {dimension_numbers = #tpu.dot_dimension_numbers<[1], [0], [0], [1], [0, 0, 1, 1], [], []>} : vector<8x32xf32>, vector<32x64xf32>, vector<8x64xf32> -> vector<8x64xf32>
    %c0_17 = arith.constant 0 : index
    %c0_18 = arith.constant 0 : index
    %18 = vector.load %arg4[%c0_17, %c0_18] : memref<1x64xf32, #tpu.memory_space<vmem>>, vector<1x64xf32>
    %19 = vector.broadcast %18 : vector<1x64xf32> to vector<8x64xf32>
    %20 = arith.addf %17, %19 : vector<8x64xf32>
    %cst_19 = arith.constant 0.000000e+00 : f32
    %21 = vector.broadcast %cst_19 : f32 to vector<8x64xf32>
    %22 = arith.maximumf %20, %21 : vector<8x64xf32>
    %c0_20 = arith.constant 0 : index
    %c0_21 = arith.constant 0 : index
    %23 = vector.load %arg5[%c0_20, %c0_21] : memref<64x8xf32, #tpu.memory_space<vmem>>, vector<64x8xf32>
    %cst_22 = arith.constant dense<0.000000e+00> : vector<8x8xf32>
    %24 = tpu.matmul %22, %23, %cst_22 {dimension_numbers = #tpu.dot_dimension_numbers<[1], [0], [0], [1], [0, 0, 1, 1], [], []>} : vector<8x64xf32>, vector<64x8xf32>, vector<8x8xf32> -> vector<8x8xf32>
    %c0_23 = arith.constant 0 : index
    %c0_24 = arith.constant 0 : index
    %25 = vector.load %arg6[%c0_23, %c0_24] : memref<1x8xf32, #tpu.memory_space<vmem>>, vector<1x8xf32>
    %26 = vector.broadcast %25 : vector<1x8xf32> to vector<8x8xf32>
    %27 = arith.addf %24, %26 : vector<8x8xf32>
    %cst_25 = arith.constant 0.000000e+00 : f32
    %28 = vector.broadcast %cst_25 : f32 to vector<8x8xf32>
    %29 = arith.cmpf ogt, %27, %28 : vector<8x8xf32>
    %30 = arith.xori %14, %29 : vector<8x8xi1>
    %31 = arith.extui %30 : vector<8x8xi1> to vector<8x8xi32>
    %32 = arith.sitofp %31 : vector<8x8xi32> to vector<8x8xf32>
    %c0_26 = arith.constant 0 : index
    %c0_27 = arith.constant 0 : index
    %33 = vector.load %arg7[%c0_26, %c0_27] : memref<8x8xf32, #tpu.memory_space<vmem>>, vector<8x8xf32>
    tpu.vector_store %arg7[%c0_26, %c0_27], %32 {strides = array<i32>} : memref<8x8xf32, #tpu.memory_space<vmem>>, vector<8x8xf32>,
    return
  }
  func.func @transform_0(%arg0: i32) -> (i32, i32) {
    %c0_i32 = arith.constant 0 : i32
    %c0_i32_0 = arith.constant 0 : i32
    return %arg0, %c0_i32 : i32, i32
  }
  func.func @transform_1(%arg0: i32) -> (i32, i32) {
    %c0_i32 = arith.constant 0 : i32
    %c0_i32_0 = arith.constant 0 : i32
    return %arg0, %c0_i32 : i32, i32
  }
  func.func @transform_2(%arg0: i32) -> (i32, i32) {
    %c0_i32 = arith.constant 0 : i32
    %c0_i32_0 = arith.constant 0 : i32
    %c0_i32_1 = arith.constant 0 : i32
    return %c0_i32, %c0_i32_0 : i32, i32
  }
  func.func @transform_3(%arg0: i32) -> (i32, i32) {
    %c0_i32 = arith.constant 0 : i32
    %c0_i32_0 = arith.constant 0 : i32
    %c0_i32_1 = arith.constant 0 : i32
    return %c0_i32, %c0_i32_0 : i32, i32
  }
  func.func @transform_4(%arg0: i32) -> (i32, i32) {
    %c0_i32 = arith.constant 0 : i32
    %c0_i32_0 = arith.constant 0 : i32
    %c0_i32_1 = arith.constant 0 : i32
    return %c0_i32, %c0_i32_0 : i32, i32
  }
  func.func @transform_5(%arg0: i32) -> (i32, i32) {
    %c0_i32 = arith.constant 0 : i32
    %c0_i32_0 = arith.constant 0 : i32
    %c0_i32_1 = arith.constant 0 : i32
    return %c0_i32, %c0_i32_0 : i32, i32
  }
  func.func @transform_6(%arg0: i32) -> (i32, i32) {
    %c0_i32 = arith.constant 0 : i32
    %c0_i32_0 = arith.constant 0 : i32
    return %arg0, %c0_i32 : i32, i32
  }
}

</mosaic_0001>

<bundles_post_ra>
// kernel: tpu_custom_call.1
= control target key start
LH: loop header
LB: loop body
LE: loop exit
PB: predicated region body
PF: predicated region fallthrough
CT: control target
= control target key end

     0   :  { %v528_v3 = vmov 0.0|0.0   ;;  %vm529_vm0 = vmmov 0   ;;  %v530_v6 = vmov 0.0   ;;  %s636_s0 = inlined_call_operand.vmem [shape: f32[8,32], index: 0, kind: input, shape index: {}]   ;;  %s637_s1 = inlined_call_operand.vmem [shape: f32[8,32], index: 1, kind: input, shape index: {}]   ;;  %s638_s2 = inlined_call_operand.vmem [shape: f32[32,64], index: 2, kind: input, shape index: {}]   ;;  %s639_s3 = inlined_call_operand.vmem [shape: f32[1,64], index: 3, kind: input, shape index: {}]   ;;  %s640_s4 = inlined_call_operand.vmem [shape: f32[64,8], index: 4, kind: input, shape index: {}]   ;;  %s641_s5 = inlined_call_operand.vmem [shape: f32[1,8], index: 5, kind: input, shape index: {}]   ;;  %s642_s6 = inlined_call_operand.hbm [shape: f32[8,8], index: 6, kind: output, shape index: {}]  }
   0x1   :  { %v25_v0 = vld [vmem:[%s638_s2] sm:$0xff]  ;;  %v26_v1 = vld [vmem:[%s638_s2 + $0x8] sm:$0xff]  ;;  %v27_v2 = vld [vmem:[%s638_s2 + $0x10] sm:$0xff]  ;;  %464 = vmatprep.subr.bf16.mxu1 %v528_v3  ;;  %482 = vmatprep.subr.bf16.mxu0 %v528_v3 }
   0x2   :  { %v465_v4 = vpack.c.bf16 %v26_v1, %v25_v0  ;;  %v28_v5 = vld [vmem:[%s638_s2 + $0x18] sm:$0xff]  ;;  %412 = vmatprep.mubr.msk.f32.mxu1 %vm529_vm0, %v530_v6  ;;  %442 = vmatprep.mubr.msk.f32.mxu0 %vm529_vm0, %v530_v6  ;;  %v111_v8 = vld [vmem:[%s640_s4] sm:$0xff]  ;;  %v112_v9 = vld [vmem:[%s640_s4 + $0x8] sm:$0xff] }
   0x3   :  { %v468_v7 = vpack.c.bf16 %v28_v5, %v27_v2 }
   0x4   :  { %466 = vmatpush3.bf16.msra.mxu1 %v465_v4  ;;  %484 = vmatpush3.bf16.msra.mxu0 %v465_v4 }
   0x5   :  { %467 = vmatprep.subr.bf16.mxu1 %v528_v3  ;;  %485 = vmatprep.subr.bf16.mxu0 %v528_v3 }
   0x6   :  { %11 = vsyncpa [#allocation3], 0  ;;  %v24_v10 = vld [vmem:[%s636_s0] sm:$0xff]  ;;  %vm36_vm1 = vcmask 261120   ;;  %v471_v12 = vpack.c.bf16 %v112_v9, %v111_v8  ;;  %v113_v13 = vld [vmem:[%s640_s4 + $0x10] sm:$0xff]  ;;  %vm126_vm2 = vcmask 523264  }
   0x7   :  { %v201_v11 = vld [vmem:[%s637_s1] sm:$0xff]  ;;  %v114_v14 = vld [vmem:[%s640_s4 + $0x18] sm:$0xff]  ;;  %v116_v17 = vld [vmem:[%s640_s4 + $0x28] sm:$0xff]  ;;  %vm353_vm5 = vcmask 64512  }
   0x8   :  { %469 = vmatpush3.bf16.msra.mxu1 %v468_v7  ;;  %487 = vmatpush3.bf16.msra.mxu0 %v468_v7  ;;  %v474_v15 = vpack.c.bf16 %v114_v14, %v113_v13  ;;  %v115_v16 = vld [vmem:[%s640_s4 + $0x20] sm:$0xff]  ;;  %v117_v19 = vld [vmem:[%s640_s4 + $0x30] sm:$0xff]  ;;  %v118_v20 = vld [vmem:[%s640_s4 + $0x38] sm:$0xff] }
   0x9   :  { %470 = vmatprep.subr.bf16.mxu1 %v528_v3  ;;  %488 = vmatprep.subr.bf16.mxu0 %v528_v3  ;;  %v477_v18 = vpack.c.bf16 %v116_v17, %v115_v16  ;;  %v480_v21 = vpack.c.bf16 %v118_v20, %v117_v19  ;;  %v369_v22 = vld [vmem:[%s639_s3] ss:$0 sm:$0xff]  ;;  %s531_s3 = smov [#allocation2]  }
   0xa   :  { %v371_v31 = vld [vmem:[%s641_s5] ss:$0 sm:$0xff]  ;;  %s361_s25 = sshll.u32 %s531_s3, 4  ;;  %s362_s25 = int_to_ptr.vmem [resolvable:$true] %s361_s25 }
   0xb   :  { %413 = vmatmul.mubr.msk.f32.vlgmr.msra.gmra.mrb[0].mxu1 %vm36_vm1, %v24_v10  ;;  %443 = vmatmul.mubr.msk.f32.vlgmr.msra.gmra.mrb[0].mxu0 %vm36_vm1, %v201_v11  ;;  %s504_s26 = scalar_lea.vmem %s362_s25, 128  ;;  %p509_p1 = scmp.lt.s32.totalorder %s362_s25, %s362_s25 }
   0xc   :  { %472 = vmatpush3.bf16.msra.mxu1 %v471_v12  ;;  %490 = vmatpush3.bf16.msra.mxu0 %v471_v12  ;;  %p505_p0 = scmp.ne.s32.totalorder %s362_s25, %s504_s26  ;;  %p510_p2 = scmp.lt.s32.totalorder %s504_s26, %s504_s26 }
   0xd   :  { %473 = vmatprep.subr.bf16.mxu1 %v528_v3  ;;  %491 = vmatprep.subr.bf16.mxu0 %v528_v3 }
   0xe   :  { %431 = vmatprep.mubr.msk.f32.mxu1 %vm529_vm0, %v530_v6  ;;  %461 = vmatprep.mubr.msk.f32.mxu0 %vm529_vm0, %v530_v6  ;;  %p511_p3 = por %p510_p2, %p509_p1 }
  0x10   :  { %475 = vmatpush3.bf16.msra.mxu1 %v474_v15  ;;  %493 = vmatpush3.bf16.msra.mxu0 %v474_v15  ;;  %p512_p4 = pnand %p511_p3, %p505_p0 }
  0x11   :  { %476 = vmatprep.subr.bf16.mxu1 %v528_v3  ;;  %494 = vmatprep.subr.bf16.mxu0 %v528_v3 }
  0x14   :  { %478 = vmatpush3.bf16.msra.mxu1 %v477_v18  ;;  %496 = vmatpush3.bf16.msra.mxu0 %v477_v18 }
  0x15   :  { %479 = vmatprep.subr.bf16.mxu1 %v528_v3  ;;  %497 = vmatprep.subr.bf16.mxu0 %v528_v3 }
  0x18   :  { %481 = vmatpush3.bf16.msra.mxu1 %v480_v21  ;;  %499 = vmatpush3.bf16.msra.mxu0 %v480_v21 }
  0xde   :  { %v106_v23 = vpop.f32.mrb[0].mxu1  ;;  %v271_v24 = vpop.f32.mrb[0].mxu0 }
  0xdf   :  { %v107_v25 = vadd.f32 %v369_v22, %v106_v23  ;;  %v272_v26 = vadd.f32 %v369_v22, %v271_v24  ;;  %v414_v27 = vpop.f32.mrb[1].mxu1  ;;  %v444_v28 = vpop.f32.mrb[1].mxu0 }
  0xe1   :  { %v110_v29 = vmax.f32 %v107_v25, 0.0  ;;  %v275_v30 = vmax.f32 %v272_v26, 0.0 }
  0xe3   :  { %432 = vmatmul.mubr.msk.f32.vlgmr.msra.gmra.mrb[2].mxu1 %vm126_vm2, %v110_v29  ;;  %462 = vmatmul.mubr.msk.f32.vlgmr.msra.gmra.mrb[2].mxu0 %vm126_vm2, %v275_v30 }
 0x1b6   :  { %v196_v32 = vpop.f32.mrb[2].mxu1  ;;  %v345_v33 = vpop.f32.mrb[2].mxu0 }
 0x1b7   :  { %v197_v34 = vadd.f32 %v371_v31, %v196_v32  ;;  %v346_v35 = vadd.f32 %v371_v31, %v345_v33  ;;  %v433_v36 = vpop.f32.mrb[3].mxu1  ;;  %v463_v37 = vpop.f32.mrb[3].mxu0 }
 0x1b9   :  { %vm200_vm3 = vcmp.gt.f32.partialorder %v197_v34, 0.0  ;;  %vm349_vm4 = vcmp.gt.f32.partialorder %v346_v35, 0.0 }
 0x1ba   :  { %vm350_vm6 = vmxor %vm200_vm3, %vm349_vm4 }
 0x1bb   :  { %v375_v38 = vsel %vm350_vm6, 1.0, %v530_v6 }
 0x1bc   :  { %354 = vst.msk [vmem:[#allocation2] sm:$0xff] %vm353_vm5, %v375_v38 }
 0x1bd   :  { %515 = shalt.err (!%p512_p4)
}
 0x1be   :  { %s516_s28 = scalar_lea.hbm %s642_s6, 128 }
 0x1bf   :  { %p517_p5 = scmp.ne.s32.totalorder %s642_s6, %s516_s28  ;;  %p520_p6 = scmp.lt.u32.totalorder %s516_s28, %s642_s6 }
 0x1c1   :  { %p522_p7 = pnand %p520_p6, %p517_p5 }
 0x1c3   :  { %525 = shalt.err (!%p522_p7)
}
 0x1c4   :  { %364 = dma.vmem_to_hbm [thread:$0]  %s362_s25, 128, %s642_s6, [#allocation3]  }
 0x1c5   :  { %526 = dma.done.wait [#allocation3], 128  }
 0x1c6   :  { %527 = vsyncadd [#allocation3], 4294967168 }
 0x1c7   :  { %368 = vsyncpa [#allocation3], 1 }

</bundles_post_ra>
